<compile_context>
chip_gen: v5e
topology: v5e:2x2
jax: 0.10.0
libtpu: 0.0.40
codegen_flags: <defaults>
</compile_context>

<pallas_src>
import functools
import math

import jax
import jax.numpy as jnp
from jax import lax
from jax.experimental import pallas as pl
from jax.experimental.pallas import tpu as pltpu

_LANES = 128
_ACC_ROWS_MAX = 64  # accumulator rows (8 f32 vregs -> 8 independent add chains)


def _round_up(x, m):
    return ((x + m - 1) // m) * m


def _min_sublanes(dtype) -> int:
    # Sublane tiling granularity per dtype width (f32:8, bf16/f16:16, int8/fp8:32).
    return {4: 8, 2: 16, 1: 32}.get(jnp.dtype(dtype).itemsize, 8)


def _device_defaults():
    """Per-generation defaults: per-step HBM bytes per input tile, VMEM limit, cores."""
    kind = ""
    try:
        kind = jax.devices()[0].device_kind.lower()
    except Exception:
        pass
    if "v7" in kind:
        # 2 TCs/chip, ~3.2 TB/s per TC, 64 MiB physical VMEM (32 MiB scoped default).
        return {"tile_bytes": 8 << 20, "vmem_limit_bytes": 48 << 20, "num_cores": 2}
    if "v6" in kind:
        # 1 TC, ~1.35 TB/s, 128 MiB physical VMEM.
        return {"tile_bytes": 4 << 20, "vmem_limit_bytes": 40 << 20, "num_cores": 1}
    if "v5 lite" in kind or "v5e" in kind or "v5lite" in kind:
        # 1 TC, ~0.82 TB/s, 16 MiB scoped VMEM default -> keep DB inputs <= 8 MiB.
        return {"tile_bytes": 2 << 20, "vmem_limit_bytes": None, "num_cores": 1}
    # Unknown chip (v4/v5p/CPU-interpret/...): conservative settings that compile anywhere.
    return {"tile_bytes": 2 << 20, "vmem_limit_bytes": None, "num_cores": 1}


def _rmse_sumsq_kernel(yhat_ref, y_ref, out_ref, acc_ref, *,
                       block_rows, rows, blocks_per_core, need_mask, acc_rows):
    c = pl.program_id(0)   # core / parallel axis
    i = pl.program_id(1)   # reduction axis (arbitrary)

    @pl.when(i == 0)
    def _():
        acc_ref[...] = jnp.zeros_like(acc_ref)

    d = yhat_ref[...].astype(jnp.float32) - y_ref[...].astype(jnp.float32)
    sq = d * d

    def _fold(v):
        # (block_rows, 128) -> (acc_rows, 128) by pure elementwise vreg adds.
        return v.reshape(block_rows // acc_rows, acc_rows, _LANES).sum(axis=0)

    if need_mask:
        # Logical (unclamped) block id; only the block crossing `rows` (and any
        # clamped duplicate block) pays the iota+where masking cost.
        row0 = (c * blocks_per_core + i) * block_rows

        @pl.when(row0 + block_rows <= rows)
        def _():
            acc_ref[...] += _fold(sq)

        @pl.when(row0 + block_rows > rows)
        def _():
            row_ids = row0 + lax.broadcasted_iota(jnp.int32, (block_rows, _LANES), 0)
            acc_ref[...] += _fold(jnp.where(row_ids < rows, sq, 0.0))
    else:
        acc_ref[...] += _fold(sq)

    @pl.when(i == pl.num_programs(1) - 1)
    def _():
        # Fold this core's (acc_rows, 128) partial sums down to its (8, 128) output.
        out_ref[...] = acc_ref[...].reshape(acc_rows // 8, 8, _LANES).sum(axis=0)


def rmse_loss(yhat, y, eps=1e-6, *, tile_bytes=None, num_cores=None,
              vmem_limit_bytes=None):
    """sqrt(mean((yhat - y)**2) + eps), matching the PyTorch RMSELoss module."""
    assert yhat.shape == y.shape, "yhat and y must have the same shape"
    n_elems = int(yhat.size)
    assert n_elems > 0

    defaults = _device_defaults()
    if tile_bytes is None:
        tile_bytes = defaults["tile_bytes"]
    if num_cores is None:
        num_cores = defaults["num_cores"]
    if vmem_limit_bytes is None:
        vmem_limit_bytes = defaults["vmem_limit_bytes"]

    flat_yhat = yhat.reshape(-1)   # keep native dtype; cast happens in-kernel
    flat_y = y.reshape(-1)

    rows = n_elems // _LANES
    rem = n_elems - rows * _LANES

    total = jnp.zeros((), jnp.float32)

    if rows > 0:
        # 128-aligned prefix streamed through the kernel.  No jnp.pad: when the
        # size is unaligned only the <128-element remainder is handled in XLA.
        if rem == 0:
            main_yhat, main_y = flat_yhat, flat_y
        else:
            main_yhat = flat_yhat[: rows * _LANES]
            main_y = flat_y[: rows * _LANES]
        yhat2d = main_yhat.reshape(rows, _LANES)
        y2d = main_y.reshape(rows, _LANES)

        # Tile size from a per-step HBM byte budget (dtype-aware), rounded to
        # the sublane granularity and clipped to the array size.
        itemsize = max(jnp.dtype(yhat.dtype).itemsize, jnp.dtype(y.dtype).itemsize)
        sub = max(_min_sublanes(yhat.dtype), _min_sublanes(y.dtype))
        block_rows = max(int(tile_bytes) // (_LANES * itemsize), sub)
        block_rows = _round_up(block_rows, sub)
        block_rows = min(block_rows, _round_up(rows, sub))

        n_blocks = pl.cdiv(rows, block_rows)
        num_cores = max(1, min(int(num_cores), n_blocks))
        blocks_per_core = pl.cdiv(n_blocks, num_cores)
        # Mask only needed if the (num_cores x blocks_per_core) grid over-covers `rows`.
        need_mask = (num_cores * blocks_per_core * block_rows != rows)
        acc_rows = math.gcd(block_rows, _ACC_ROWS_MAX)

        def in_map(c, i):
            # Clamp so (rare) duplicated tail blocks re-read the last real block;
            # their contribution is masked to zero in the kernel.
            b = jnp.minimum(c * blocks_per_core + i, n_blocks - 1)
            return (b, 0)

        kernel = functools.partial(
            _rmse_sumsq_kernel,
            block_rows=block_rows,
            rows=rows,
            blocks_per_core=blocks_per_core,
            need_mask=need_mask,
            acc_rows=acc_rows,
        )

        partials = pl.pallas_call(
            kernel,
            out_shape=jax.ShapeDtypeStruct((num_cores * 8, _LANES), jnp.float32),
            grid_spec=pltpu.PrefetchScalarGridSpec(
                num_scalar_prefetch=0,
                grid=(num_cores, blocks_per_core),
                in_specs=[
                    pl.BlockSpec((block_rows, _LANES), in_map),
                    pl.BlockSpec((block_rows, _LANES), in_map),
                ],
                out_specs=pl.BlockSpec((8, _LANES), lambda c, i: (c, 0)),
                scratch_shapes=[pltpu.VMEM((acc_rows, _LANES), jnp.float32)],
            ),
            compiler_params=pltpu.CompilerParams(
                dimension_semantics=("parallel", "arbitrary"),
                vmem_limit_bytes=vmem_limit_bytes,
            ),
        )(yhat2d, y2d)
        total = total + jnp.sum(partials)

    if rem > 0:
        # <128-element remainder: trivial XLA reduction, added into the total.
        tail_d = (flat_yhat[rows * _LANES:].astype(jnp.float32)
                  - flat_y[rows * _LANES:].astype(jnp.float32))
        total = total + jnp.sum(tail_d * tail_d)

    return jnp.sqrt(total / jnp.float32(n_elems) + jnp.float32(eps))


if __name__ == "__main__":
    key = jax.random.PRNGKey(0)
    k1, k2, k3, k4 = jax.random.split(key, 4)

    # Primary check: small NCHW-style regression output (128-aligned: 2048 elems).
    shape = (2, 4, 16, 16)
    yhat = jax.random.normal(k1, shape, dtype=jnp.float32)
    y = jax.random.normal(k2, shape, dtype=jnp.float32)
    loss = jax.block_until_ready(rmse_loss(yhat, y, eps=1e-6))
    ref = jnp.sqrt(jnp.mean((yhat - y) ** 2) + 1e-6)
    assert jnp.allclose(loss, ref, rtol=1e-5, atol=1e-6), (loss, ref)

    # Unaligned size with rows < 8: exercises the in-kernel tail mask + the
    # XLA remainder path (guards the edge cases called out in the review).
    yhat_u = jax.random.normal(k3, (1000,), dtype=jnp.float32)
    y_u = jax.random.normal(k4, (1000,), dtype=jnp.float32)
    loss_u = jax.block_until_ready(rmse_loss(yhat_u, y_u, eps=1e-6))
    ref_u = jnp.sqrt(jnp.mean((yhat_u - y_u) ** 2) + 1e-6)
    assert jnp.allclose(loss_u, ref_u, rtol=1e-5, atol=1e-6), (loss_u, ref_u)

    # bf16 inputs stream in native dtype and are cast to f32 inside the kernel.
    yhat_b = yhat.astype(jnp.bfloat16)
    y_b = y.astype(jnp.bfloat16)
    loss_b = jax.block_until_ready(rmse_loss(yhat_b, y_b, eps=1e-6))
    ref_b = jnp.sqrt(jnp.mean((yhat_b.astype(jnp.float32)
                               - y_b.astype(jnp.float32)) ** 2) + 1e-6)
    assert jnp.allclose(loss_b, ref_b, rtol=1e-3, atol=1e-3), (loss_b, ref_b)

    print("KERNEL_OK")
</pallas_src>

<mosaic_0001>
module attributes {stable_mosaic.version = 11 : i64} {
  func.func @_rmse_sumsq_kernel(%arg0: i32, %arg1: i32, %arg2: memref<16x128xf32, #tpu.memory_space<vmem>>, %arg3: memref<16x128xf32, #tpu.memory_space<vmem>>, %arg4: memref<8x128xf32, #tpu.memory_space<vmem>>, %arg5: memref<16x128xf32, #tpu.memory_space<vmem>>) attributes {dimension_semantics = [#tpu.dimension_semantics<parallel>, #tpu.dimension_semantics<arbitrary>], iteration_bounds = array<i64: 1, 1>, scalar_prefetch = 0 : i64, scratch_operands = 1 : i64, tpu.core_type = #tpu.core_type<tc>, window_params = [{transform_indices = @transform_0, window_bounds = array<i64: 16, 128>}, {transform_indices = @transform_1, window_bounds = array<i64: 16, 128>}, {transform_indices = @transform_2, window_bounds = array<i64: 8, 128>}]} {
    %c0_i32 = arith.constant 0 : i32
    %0 = arith.cmpi eq, %arg1, %c0_i32 : i32
    %1 = arith.extui %0 : i1 to i32
    %c0_i32_0 = arith.constant 0 : i32
    %2 = arith.cmpi ne, %1, %c0_i32_0 : i32
    scf.if %2 {
      %cst_10 = arith.constant 0.000000e+00 : f32
      %15 = vector.broadcast %cst_10 : f32 to vector<16x128xf32>
      %c0_11 = arith.constant 0 : index
      %c0_12 = arith.constant 0 : index
      %16 = vector.load %arg5[%c0_11, %c0_12] : memref<16x128xf32, #tpu.memory_space<vmem>>, vector<16x128xf32>
      tpu.vector_store %arg5[%c0_11, %c0_12], %15 {strides = array<i32>} : memref<16x128xf32, #tpu.memory_space<vmem>>, vector<16x128xf32>,
    } else {
    }
    %c0 = arith.constant 0 : index
    %c0_1 = arith.constant 0 : index
    %3 = vector.load %arg2[%c0, %c0_1] : memref<16x128xf32, #tpu.memory_space<vmem>>, vector<16x128xf32>
    %c0_2 = arith.constant 0 : index
    %c0_3 = arith.constant 0 : index
    %4 = vector.load %arg3[%c0_2, %c0_3] : memref<16x128xf32, #tpu.memory_space<vmem>>, vector<16x128xf32>
    %5 = arith.subf %3, %4 : vector<16x128xf32>
    %6 = arith.mulf %5, %5 : vector<16x128xf32>
    %c0_4 = arith.constant 0 : index
    %c0_5 = arith.constant 0 : index
    %7 = vector.load %arg5[%c0_4, %c0_5] : memref<16x128xf32, #tpu.memory_space<vmem>>, vector<16x128xf32>
    %8 = vector.shape_cast %6 : vector<16x128xf32> to vector<1x16x128xf32>
    %cst = arith.constant dense<0.000000e+00> : vector<16x128xf32>
    %9 = vector.multi_reduction <add>, %8, %cst [0] : vector<1x16x128xf32> to vector<16x128xf32>
    %10 = arith.addf %7, %9 : vector<16x128xf32>
    %c0_6 = arith.constant 0 : index
    %c0_7 = arith.constant 0 : index
    %11 = vector.load %arg5[%c0_6, %c0_7] : memref<16x128xf32, #tpu.memory_space<vmem>>, vector<16x128xf32>
    tpu.vector_store %arg5[%c0_6, %c0_7], %10 {strides = array<i32>} : memref<16x128xf32, #tpu.memory_space<vmem>>, vector<16x128xf32>,
    %c0_i32_8 = arith.constant 0 : i32
    %12 = arith.cmpi eq, %arg1, %c0_i32_8 : i32
    %13 = arith.extui %12 : i1 to i32
    %c0_i32_9 = arith.constant 0 : i32
    %14 = arith.cmpi ne, %13, %c0_i32_9 : i32
    scf.if %14 {
      %c0_10 = arith.constant 0 : index
      %c0_11 = arith.constant 0 : index
      %15 = vector.load %arg5[%c0_10, %c0_11] : memref<16x128xf32, #tpu.memory_space<vmem>>, vector<16x128xf32>
      %16 = vector.shape_cast %15 : vector<16x128xf32> to vector<2x8x128xf32>
      %cst_12 = arith.constant dense<0.000000e+00> : vector<8x128xf32>
      %17 = vector.multi_reduction <add>, %16, %cst_12 [0] : vector<2x8x128xf32> to vector<8x128xf32>
      %c0_13 = arith.constant 0 : index
      %c0_14 = arith.constant 0 : index
      %18 = vector.load %arg4[%c0_13, %c0_14] : memref<8x128xf32, #tpu.memory_space<vmem>>, vector<8x128xf32>
      tpu.vector_store %arg4[%c0_13, %c0_14], %17 {strides = array<i32>} : memref<8x128xf32, #tpu.memory_space<vmem>>, vector<8x128xf32>,
    } else {
    }
    return
  }
  func.func @transform_0(%arg0: i32, %arg1: i32) -> (i32, i32) {
    %c1_i32 = arith.constant 1 : i32
    %0 = arith.muli %arg0, %c1_i32 : i32
    %1 = arith.addi %0, %arg1 : i32
    %c0_i32 = arith.constant 0 : i32
    %2 = arith.minsi %1, %c0_i32 : i32
    %c0_i32_0 = arith.constant 0 : i32
    %c0_i32_1 = arith.constant 0 : i32
    return %2, %c0_i32_0 : i32, i32
  }
  func.func @transform_1(%arg0: i32, %arg1: i32) -> (i32, i32) {
    %c1_i32 = arith.constant 1 : i32
    %0 = arith.muli %arg0, %c1_i32 : i32
    %1 = arith.addi %0, %arg1 : i32
    %c0_i32 = arith.constant 0 : i32
    %2 = arith.minsi %1, %c0_i32 : i32
    %c0_i32_0 = arith.constant 0 : i32
    %c0_i32_1 = arith.constant 0 : i32
    return %2, %c0_i32_0 : i32, i32
  }
  func.func @transform_2(%arg0: i32, %arg1: i32) -> (i32, i32) {
    %c0_i32 = arith.constant 0 : i32
    %c0_i32_0 = arith.constant 0 : i32
    return %arg0, %c0_i32 : i32, i32
  }
}

</mosaic_0001>

<bundles_post_ra>
// kernel: tpu_custom_call.1
= control target key start
LH: loop header
LB: loop body
LE: loop exit
PB: predicated region body
PF: predicated region fallthrough
CT: control target
= control target key end

     0   :  { %7 = vsyncpa [#allocation4], 0  ;;  %s227_s0 = inlined_call_operand.hbm [shape: f32[16,128], index: 0, kind: input, shape index: {}]   ;;  %s228_s1 = inlined_call_operand.hbm [shape: f32[16,128], index: 1, kind: input, shape index: {}]   ;;  %s229_s2 = inlined_call_operand.hbm [shape: f32[8,128], index: 2, kind: output, shape index: {}]  }
   0x1   :  { %8 = vsyncpa [#allocation7], 0 }
   0x2   :  { %9 = vsyncpa [#allocation5], 0  ;;  %s20_s11 = sshll.u32 %s227_s0, 4  ;;  %s198_s12 = smov [#allocation3]   ;;  %s21_s11 = int_to_ptr.hbm [resolvable:$true] %s20_s11 }
   0x3   :  { %s22_s13 = sshll.u32 %s198_s12, 4  ;;  %s39_s16 = sshll.u32 %s228_s1, 4  ;;  %s23_s13 = int_to_ptr.vmem [resolvable:$true] %s22_s13  ;;  %s40_s16 = int_to_ptr.hbm [resolvable:$true] %s39_s16 }
   0x4   :  { %s199_s17 = smov 128   ;;  %s200_s18 = smov 8  }
   0x5   :  { %28 = dma.hbm_to_vmem [thread:$0]  %s21_s11, 256, %s23_s13, [#allocation4], %s199_s17, %s199_s17, %s200_s18  }
   0x6   :  { %s201_s19 = smov [#allocation6]  }
   0x7   :  { %s41_s20 = sshll.u32 %s201_s19, 4  ;;  %s42_s20 = int_to_ptr.vmem [resolvable:$true] %s41_s20 }
   0x8   :  { %47 = dma.hbm_to_vmem [thread:$0]  %s40_s16, 256, %s42_s20, [#allocation7], %s199_s17, %s199_s17, %s200_s18  }
   0x9   :  { %192 = dma.done.wait [#allocation4], 256  }
   0xa   :  { %193 = vsyncadd [#allocation4], 4294967040 }
   0xb   :  { %194 = dma.done.wait [#allocation7], 256  }
   0xc   :  { %195 = vsyncadd [#allocation7], 4294967040  ;;  %v70_v0 = vld [vmem:[#allocation3] sm:$0xff]  ;;  %v71_v1 = vld [vmem:[#allocation3 + $0x8] sm:$0xff]  ;;  %s202_s0 = smov [#allocation8]   ;;  %s100_s23 = sshll.u32 %s229_s2, 4  ;;  %s101_s23 = int_to_ptr.hbm [resolvable:$true] %s100_s23 }
   0xd   :  { %v72_v2 = vld [vmem:[#allocation6] sm:$0xff]  ;;  %v73_v3 = vld [vmem:[#allocation6 + $0x8] sm:$0xff]  ;;  %s98_s1 = sshll.u32 %s202_s0, 4  ;;  %s99_s1 = int_to_ptr.vmem [resolvable:$true] %s98_s1 }
   0xe   :  { %v74_v4 = vsub.f32 %v70_v0, %v72_v2  ;;  %v75_v5 = vsub.f32 %v71_v1, %v73_v3 }
  0x10   :  { %v76_v6 = vmul.f32 %v74_v4, %v74_v4  ;;  %v77_v7 = vmul.f32 %v75_v5, %v75_v5 }
  0x12   :  { %v91_v8 = vadd.f32 %v77_v7, %v76_v6 }
  0x14   :  { %92 = vst [vmem:[#allocation8] sm:$0xff] %v91_v8 }
  0x15   :  { %103 = dma.vmem_to_hbm [thread:$0]  %s99_s1, 128, %s101_s23, [#allocation5]  }
  0x16   :  { %196 = dma.done.wait [#allocation5], 128  }
  0x17   :  { %197 = vsyncadd [#allocation5], 4294967168 }
  0x18   :  { %108 = vsyncpa [#allocation4], 1 }
  0x19   :  { %109 = vsyncpa [#allocation7], 1 }
  0x1a   :  { %110 = vsyncpa [#allocation5], 1 }

</bundles_post_ra>
